<compile_context>
chip_gen: v7x
topology: tpu7x:2x2x1
jax: 0.10.0
libtpu: 0.0.40
codegen_flags: <defaults>
</compile_context>

<pallas_src>
import functools

import jax
import jax.numpy as jnp
from jax.experimental import pallas as pl
from jax.experimental.pallas import tpu as pltpu


def _round_up(n, m):
    return ((n + m - 1) // m) * m


def ffn_kernel(x_ref, w1_ref, b1_ref, w2_ref, b2_ref, g_ref, beta_ref, o_ref,
               *, eps, inv_d, compute_dtype):
    # x_ref: (tm, d_in) tile of tokens, kept in f32 for the residual + LayerNorm path.
    x = x_ref[...].astype(jnp.float32)

    # layer_1 + ReLU  (low-precision operands -> MXU, f32 accumulation)
    h = jnp.dot(x.astype(compute_dtype), w1_ref[...],
                preferred_element_type=jnp.float32) + b1_ref[...].astype(jnp.float32)
    h = jnp.maximum(h, 0.0)

    # layer_2  (low-precision operands -> MXU, f32 accumulation)
    y = jnp.dot(h.astype(compute_dtype), w2_ref[...],
                preferred_element_type=jnp.float32) + b2_ref[...].astype(jnp.float32)

    # TODO(synk): nn.Dropout is stochastic in training mode; eval-mode (identity) used here.

    # residual add (f32)
    z = y + x

    # LayerNorm over the feature (lane) axis, eps=1e-6, all in f32.
    mean = jnp.sum(z, axis=-1, keepdims=True) * inv_d
    cent = z - mean
    var = jnp.sum(cent * cent, axis=-1, keepdims=True) * inv_d
    zn = cent * jax.lax.rsqrt(var + eps)
    o_ref[...] = (zn * g_ref[...].astype(jnp.float32)
                  + beta_ref[...].astype(jnp.float32)).astype(o_ref.dtype)


def feed_forward_net(x, params, *, tm=512, eps=1e-6,
                     compute_dtype=jnp.bfloat16,
                     vmem_limit_bytes=48 * 1024 * 1024):
    """x: (B, S, d_in) float32.  Returns (B, S, d_in)."""
    B, S, d_in = x.shape
    w1t, b1, w2t, b2, gamma, beta = params
    d_latent = w1t.shape[1]
    N = B * S

    # MXU-friendly token tile; clamp for tiny inputs, pad N up to a tile multiple.
    tm_eff = max(8, min(tm, _round_up(N, 8)))
    N_pad = _round_up(N, tm_eff)

    x2d = x.reshape(N, d_in)
    if N_pad != N:
        x2d = jnp.pad(x2d, ((0, N_pad - N), (0, 0)))

    # Low-precision matmul operands (halves resident weight VMEM + weight DMA bytes).
    w1c = w1t.astype(compute_dtype)
    w2c = w2t.astype(compute_dtype)

    out2d = pl.pallas_call(
        functools.partial(ffn_kernel, eps=eps, inv_d=1.0 / d_in,
                          compute_dtype=compute_dtype),
        out_shape=jax.ShapeDtypeStruct((N_pad, d_in), x.dtype),
        grid_spec=pltpu.PrefetchScalarGridSpec(
            num_scalar_prefetch=0,
            grid=(N_pad // tm_eff,),
            in_specs=[
                pl.BlockSpec((tm_eff, d_in), lambda i: (i, 0)),      # x tile
                pl.BlockSpec((d_in, d_latent), lambda i: (0, 0)),    # W1^T (in, latent), resident
                pl.BlockSpec((1, d_latent), lambda i: (0, 0)),       # b1
                pl.BlockSpec((d_latent, d_in), lambda i: (0, 0)),    # W2^T (latent, in), resident
                pl.BlockSpec((1, d_in), lambda i: (0, 0)),           # b2
                pl.BlockSpec((1, d_in), lambda i: (0, 0)),           # LN gamma
                pl.BlockSpec((1, d_in), lambda i: (0, 0)),           # LN beta
            ],
            out_specs=pl.BlockSpec((tm_eff, d_in), lambda i: (i, 0)),
        ),
        compiler_params=pltpu.CompilerParams(
            dimension_semantics=("parallel",),
            vmem_limit_bytes=vmem_limit_bytes,
        ),
    )(x2d, w1c, b1, w2c, b2, gamma, beta)

    if N_pad != N:
        out2d = out2d[:N]
    return out2d.reshape(B, S, d_in)


def init_params(key, d_in, d_latent, dtype=jnp.float32):
    """Deterministic PyTorch-style init (uniform +-1/sqrt(fan_in)); bias=True because the
    module passes `dropout` (a nonzero float) as Linear's `bias` argument."""
    k1, k2, k3, k4 = jax.random.split(key, 4)
    bnd1 = 1.0 / jnp.sqrt(d_in)
    bnd2 = 1.0 / jnp.sqrt(d_latent)
    # Store transposed weights: (in_features, out_features)
    w1t = jax.random.uniform(k1, (d_in, d_latent), dtype, -bnd1, bnd1)
    b1 = jax.random.uniform(k2, (1, d_latent), dtype, -bnd1, bnd1)
    w2t = jax.random.uniform(k3, (d_latent, d_in), dtype, -bnd2, bnd2)
    b2 = jax.random.uniform(k4, (1, d_in), dtype, -bnd2, bnd2)
    gamma = jnp.ones((1, d_in), dtype)   # nn.LayerNorm default weight
    beta = jnp.zeros((1, d_in), dtype)   # nn.LayerNorm default bias
    return (w1t, b1, w2t, b2, gamma, beta)


def reference(x, params, eps=1e-6):
    """Pure-JAX reference of the PyTorch forward (eval mode), f32 throughout."""
    w1t, b1, w2t, b2, gamma, beta = params
    h = jnp.maximum(x @ w1t + b1[0], 0.0)
    y = h @ w2t + b2[0]
    z = y + x
    mean = jnp.mean(z, axis=-1, keepdims=True)
    var = jnp.mean((z - mean) ** 2, axis=-1, keepdims=True)
    return (z - mean) / jnp.sqrt(var + eps) * gamma[0] + beta[0]


if __name__ == "__main__":
    B, S = 2, 8
    D_MODEL = 128                # DIM_MODEL (lane-dense: multiple of 128)
    D_LATENT = D_MODEL // 2      # per the module's default d_latent = DIM_MODEL // 2

    key = jax.random.PRNGKey(0)
    kx, kp = jax.random.split(key)
    x = jax.random.normal(kx, (B, S, D_MODEL), jnp.float32)
    params = init_params(kp, D_MODEL, D_LATENT)

    ref = reference(x, params)

    # Default (bf16 matmul operands, f32 residual + LayerNorm).
    out = feed_forward_net(x, params)
    out = jax.block_until_ready(out)
    assert out.shape == (B, S, D_MODEL)
    assert jnp.allclose(out, ref, atol=5e-2, rtol=5e-2), "bf16 path mismatch vs reference"

    # Full-f32 path for a tight numerical check.
    out_f32 = feed_forward_net(x, params, compute_dtype=jnp.float32)
    out_f32 = jax.block_until_ready(out_f32)
    assert jnp.allclose(out_f32, ref, atol=1e-4, rtol=1e-4), "f32 path mismatch vs reference"

    print("KERNEL_OK")
</pallas_src>

<mosaic_0001>
module attributes {stable_mosaic.version = 11 : i64} {
  func.func @ffn_kernel(%arg0: i32, %arg1: memref<16x128xf32, #tpu.memory_space<vmem>>, %arg2: memref<128x64xbf16, #tpu.memory_space<vmem>>, %arg3: memref<1x64xf32, #tpu.memory_space<vmem>>, %arg4: memref<64x128xbf16, #tpu.memory_space<vmem>>, %arg5: memref<1x128xf32, #tpu.memory_space<vmem>>, %arg6: memref<1x128xf32, #tpu.memory_space<vmem>>, %arg7: memref<1x128xf32, #tpu.memory_space<vmem>>, %arg8: memref<16x128xf32, #tpu.memory_space<vmem>>) attributes {dimension_semantics = [#tpu.dimension_semantics<parallel>], iteration_bounds = array<i64: 1>, scalar_prefetch = 0 : i64, scratch_operands = 0 : i64, tpu.core_type = #tpu.core_type<tc>, window_params = [{transform_indices = @transform_0, window_bounds = array<i64: 16, 128>}, {pipeline_mode = #tpu.pipeline_mode<synchronous>, transform_indices = @transform_1, window_bounds = array<i64: 128, 64>}, {pipeline_mode = #tpu.pipeline_mode<synchronous>, transform_indices = @transform_2, window_bounds = array<i64: 1, 64>}, {pipeline_mode = #tpu.pipeline_mode<synchronous>, transform_indices = @transform_3, window_bounds = array<i64: 64, 128>}, {pipeline_mode = #tpu.pipeline_mode<synchronous>, transform_indices = @transform_4, window_bounds = array<i64: 1, 128>}, {pipeline_mode = #tpu.pipeline_mode<synchronous>, transform_indices = @transform_5, window_bounds = array<i64: 1, 128>}, {pipeline_mode = #tpu.pipeline_mode<synchronous>, transform_indices = @transform_6, window_bounds = array<i64: 1, 128>}, {transform_indices = @transform_7, window_bounds = array<i64: 16, 128>}]} {
    %c0 = arith.constant 0 : index
    %c0_0 = arith.constant 0 : index
    %0 = vector.load %arg1[%c0, %c0_0] : memref<16x128xf32, #tpu.memory_space<vmem>>, vector<16x128xf32>
    %1 = arith.truncf %0 : vector<16x128xf32> to vector<16x128xbf16>
    %c0_1 = arith.constant 0 : index
    %c0_2 = arith.constant 0 : index
    %2 = vector.load %arg2[%c0_1, %c0_2] : memref<128x64xbf16, #tpu.memory_space<vmem>>, vector<128x64xbf16>
    %cst = arith.constant dense<0.000000e+00> : vector<16x64xf32>
    %3 = tpu.matmul %1, %2, %cst {dimension_numbers = #tpu.dot_dimension_numbers<[1], [0], [0], [1], [0, 0, 1, 1], [], []>} : vector<16x128xbf16>, vector<128x64xbf16>, vector<16x64xf32> -> vector<16x64xf32>
    %c0_3 = arith.constant 0 : index
    %c0_4 = arith.constant 0 : index
    %4 = vector.load %arg3[%c0_3, %c0_4] : memref<1x64xf32, #tpu.memory_space<vmem>>, vector<1x64xf32>
    %5 = vector.broadcast %4 : vector<1x64xf32> to vector<16x64xf32>
    %6 = arith.addf %3, %5 : vector<16x64xf32>
    %cst_5 = arith.constant 0.000000e+00 : f32
    %7 = vector.broadcast %cst_5 : f32 to vector<16x64xf32>
    %8 = arith.maximumf %6, %7 : vector<16x64xf32>
    %9 = arith.truncf %8 : vector<16x64xf32> to vector<16x64xbf16>
    %c0_6 = arith.constant 0 : index
    %c0_7 = arith.constant 0 : index
    %10 = vector.load %arg4[%c0_6, %c0_7] : memref<64x128xbf16, #tpu.memory_space<vmem>>, vector<64x128xbf16>
    %cst_8 = arith.constant dense<0.000000e+00> : vector<16x128xf32>
    %11 = tpu.matmul %9, %10, %cst_8 {dimension_numbers = #tpu.dot_dimension_numbers<[1], [0], [0], [1], [0, 0, 1, 1], [], []>} : vector<16x64xbf16>, vector<64x128xbf16>, vector<16x128xf32> -> vector<16x128xf32>
    %c0_9 = arith.constant 0 : index
    %c0_10 = arith.constant 0 : index
    %12 = vector.load %arg5[%c0_9, %c0_10] : memref<1x128xf32, #tpu.memory_space<vmem>>, vector<1x128xf32>
    %13 = vector.broadcast %12 : vector<1x128xf32> to vector<16x128xf32>
    %14 = arith.addf %11, %13 : vector<16x128xf32>
    %15 = arith.addf %14, %0 : vector<16x128xf32>
    %cst_11 = arith.constant dense<0.000000e+00> : vector<16xf32>
    %16 = vector.multi_reduction <add>, %15, %cst_11 [1] : vector<16x128xf32> to vector<16xf32>
    %17 = vector.shape_cast %16 : vector<16xf32> to vector<16x1xf32>
    %cst_12 = arith.constant 7.812500e-03 : f32
    %18 = vector.broadcast %cst_12 : f32 to vector<16x1xf32>
    %19 = arith.mulf %17, %18 : vector<16x1xf32>
    %20 = vector.broadcast %19 : vector<16x1xf32> to vector<16x128xf32>
    %21 = arith.subf %15, %20 : vector<16x128xf32>
    %22 = arith.mulf %21, %21 : vector<16x128xf32>
    %cst_13 = arith.constant dense<0.000000e+00> : vector<16xf32>
    %23 = vector.multi_reduction <add>, %22, %cst_13 [1] : vector<16x128xf32> to vector<16xf32>
    %24 = vector.shape_cast %23 : vector<16xf32> to vector<16x1xf32>
    %cst_14 = arith.constant 7.812500e-03 : f32
    %25 = vector.broadcast %cst_14 : f32 to vector<16x1xf32>
    %26 = arith.mulf %24, %25 : vector<16x1xf32>
    %cst_15 = arith.constant 9.99999997E-7 : f32
    %27 = vector.broadcast %cst_15 : f32 to vector<16x1xf32>
    %28 = arith.addf %26, %27 : vector<16x1xf32>
    %29 = math.rsqrt %28 : vector<16x1xf32>
    %30 = vector.broadcast %29 : vector<16x1xf32> to vector<16x128xf32>
    %31 = arith.mulf %21, %30 : vector<16x128xf32>
    %c0_16 = arith.constant 0 : index
    %c0_17 = arith.constant 0 : index
    %32 = vector.load %arg6[%c0_16, %c0_17] : memref<1x128xf32, #tpu.memory_space<vmem>>, vector<1x128xf32>
    %33 = vector.broadcast %32 : vector<1x128xf32> to vector<16x128xf32>
    %34 = arith.mulf %31, %33 : vector<16x128xf32>
    %c0_18 = arith.constant 0 : index
    %c0_19 = arith.constant 0 : index
    %35 = vector.load %arg7[%c0_18, %c0_19] : memref<1x128xf32, #tpu.memory_space<vmem>>, vector<1x128xf32>
    %36 = vector.broadcast %35 : vector<1x128xf32> to vector<16x128xf32>
    %37 = arith.addf %34, %36 : vector<16x128xf32>
    %c0_20 = arith.constant 0 : index
    %c0_21 = arith.constant 0 : index
    %38 = vector.load %arg8[%c0_20, %c0_21] : memref<16x128xf32, #tpu.memory_space<vmem>>, vector<16x128xf32>
    tpu.vector_store %arg8[%c0_20, %c0_21], %37 {strides = array<i32>} : memref<16x128xf32, #tpu.memory_space<vmem>>, vector<16x128xf32>,
    return
  }
  func.func @transform_0(%arg0: i32) -> (i32, i32) {
    %c0_i32 = arith.constant 0 : i32
    %c0_i32_0 = arith.constant 0 : i32
    return %arg0, %c0_i32 : i32, i32
  }
  func.func @transform_1(%arg0: i32) -> (i32, i32) {
    %c0_i32 = arith.constant 0 : i32
    %c0_i32_0 = arith.constant 0 : i32
    %c0_i32_1 = arith.constant 0 : i32
    return %c0_i32, %c0_i32_0 : i32, i32
  }
  func.func @transform_2(%arg0: i32) -> (i32, i32) {
    %c0_i32 = arith.constant 0 : i32
    %c0_i32_0 = arith.constant 0 : i32
    %c0_i32_1 = arith.constant 0 : i32
    return %c0_i32, %c0_i32_0 : i32, i32
  }
  func.func @transform_3(%arg0: i32) -> (i32, i32) {
    %c0_i32 = arith.constant 0 : i32
    %c0_i32_0 = arith.constant 0 : i32
    %c0_i32_1 = arith.constant 0 : i32
    return %c0_i32, %c0_i32_0 : i32, i32
  }
  func.func @transform_4(%arg0: i32) -> (i32, i32) {
    %c0_i32 = arith.constant 0 : i32
    %c0_i32_0 = arith.constant 0 : i32
    %c0_i32_1 = arith.constant 0 : i32
    return %c0_i32, %c0_i32_0 : i32, i32
  }
  func.func @transform_5(%arg0: i32) -> (i32, i32) {
    %c0_i32 = arith.constant 0 : i32
    %c0_i32_0 = arith.constant 0 : i32
    %c0_i32_1 = arith.constant 0 : i32
    return %c0_i32, %c0_i32_0 : i32, i32
  }
  func.func @transform_6(%arg0: i32) -> (i32, i32) {
    %c0_i32 = arith.constant 0 : i32
    %c0_i32_0 = arith.constant 0 : i32
    %c0_i32_1 = arith.constant 0 : i32
    return %c0_i32, %c0_i32_0 : i32, i32
  }
  func.func @transform_7(%arg0: i32) -> (i32, i32) {
    %c0_i32 = arith.constant 0 : i32
    %c0_i32_0 = arith.constant 0 : i32
    return %arg0, %c0_i32 : i32, i32
  }
}

</mosaic_0001>

<bundles_post_ra>
// kernel: tpu_custom_call.1
= control target key start
LH: loop header
LB: loop body
LE: loop exit
PB: predicated region body
PF: predicated region fallthrough
CT: control target
= control target key end

     0   :  { %v398_v1 = vmov 0.0   ;;  %vm399_vm0 = vmmov 0   ;;  %s509_s0 = inlined_call_operand.vmem [shape: f32[16,128], index: 0, kind: input, shape index: {}]   ;;  %s510_s1 = inlined_call_operand.vmem [shape: bf16[128,64], index: 1, kind: input, shape index: {}]   ;;  %s511_s2 = inlined_call_operand.vmem [shape: f32[1,64], index: 2, kind: input, shape index: {}]   ;;  %s512_s3 = inlined_call_operand.vmem [shape: bf16[64,128], index: 3, kind: input, shape index: {}]   ;;  %s513_s4 = inlined_call_operand.vmem [shape: f32[1,128], index: 4, kind: input, shape index: {}]   ;;  %s514_s5 = inlined_call_operand.vmem [shape: f32[1,128], index: 5, kind: input, shape index: {}]   ;;  %s515_s6 = inlined_call_operand.vmem [shape: f32[1,128], index: 6, kind: input, shape index: {}]   ;;  %s516_s7 = inlined_call_operand.hbm [shape: f32[16,128], index: 7, kind: output, shape index: {}]  }
   0x1   :  { %v358_v0 = vld [vmem:[%s510_s1] sm:$0xff]   ;;  %321 = vmatprep.subr.bf16.mxu0 %v398_v1  ;;  %341 = vmatprep.subr.bf16.mxu1 %v398_v1  ;;  %v359_v2 = vld [vmem:[%s510_s1 + $0x8] sm:$0xff]   ;;  %v360_v3 = vld [vmem:[%s510_s1 + $0x10] sm:$0xff]  }
   0x2   :  { %322 = vmatpush3.bf16.msra.mxu0 %v358_v0  ;;  %337 = vmatprep.mubr.msk.bf16.mxu0 %vm399_vm0, %v398_v1  ;;  %v366_v4 = vld [vmem:[%s512_s3] sm:$0xff]   ;;  %v361_v5 = vld [vmem:[%s510_s1 + $0x18] sm:$0xff]   ;;  %v367_v6 = vld [vmem:[%s512_s3 + $0x8] sm:$0xff]  }
   0x3   :  { %323 = vmatprep.subr.bf16.mxu0 %v398_v1  ;;  %349 = vmatprep.mubr.msk.bf16.mxu1 %vm399_vm0, %v398_v1 }
   0x4   :  { %342 = vmatpush3.bf16.msra.mxu1 %v366_v4 }
   0x5   :  { %343 = vmatprep.subr.bf16.mxu1 %v398_v1 }
   0x6   :  { %324 = vmatpush3.bf16.msra.mxu0 %v359_v2 }
   0x7   :  { %325 = vmatprep.subr.bf16.mxu0 %v398_v1 }
   0xa   :  { %326 = vmatpush3.bf16.msra.mxu0 %v360_v3 }
   0xb   :  { %327 = vmatprep.subr.bf16.mxu0 %v398_v1 }
   0xc   :  { %12 = vsyncpa [#allocation3], 0  ;;  %v362_v7 = vld [vmem:[%s510_s1 + $0x20] sm:$0xff]   ;;  %344 = vmatpush3.bf16.msra.mxu1 %v367_v6  ;;  %v363_v8 = vld [vmem:[%s510_s1 + $0x28] sm:$0xff]   ;;  %vm185_vm1 = vcmask 523264   ;;  %s400_s9 = smov [#allocation2]  }
   0xd   :  { %345 = vmatprep.subr.bf16.mxu1 %v398_v1  ;;  %v364_v9 = vld [vmem:[%s510_s1 + $0x30] sm:$0xff]   ;;  %v365_v10 = vld [vmem:[%s510_s1 + $0x38] sm:$0xff]   ;;  %v28_v11 = vld [vmem:[%s509_s0] sm:$0xff]  ;;  %s279_s10 = sshll.u32 %s400_s9, 4  ;;  %s280_s10 = int_to_ptr.vmem [resolvable:$true] %s279_s10 }
   0xe   :  { %328 = vmatpush3.bf16.msra.mxu0 %v361_v5  ;;  %v29_v12 = vld [vmem:[%s509_s0 + $0x8] sm:$0xff]  ;;  %v368_v14 = vld [vmem:[%s512_s3 + $0x10] sm:$0xff]   ;;  %v369_v15 = vld [vmem:[%s512_s3 + $0x18] sm:$0xff]   ;;  %s374_s11 = scalar_lea.vmem %s280_s10, 256  ;;  %p379_p1 = scmp.lt.s32.totalorder %s280_s10, %s280_s10 }
   0xf   :  { %329 = vmatprep.subr.bf16.mxu0 %v398_v1  ;;  %v30_v13 = vpack.c.bf16 %v29_v12, %v28_v11  ;;  %v290_v16 = vld [vmem:[%s511_s2] ss:$0 sm:$0xff]  ;;  %p375_p0 = scmp.ne.s32.totalorder %s280_s10, %s374_s11  ;;  %p380_p2 = scmp.lt.s32.totalorder %s374_s11, %s374_s11 }
  0x10   :  { %346 = vmatpush3.bf16.msra.mxu1 %v368_v14  ;;  %v299_v26 = vld [vmem:[%s513_s4] ss:$0 sm:$0xff] }
  0x11   :  { %347 = vmatprep.subr.bf16.mxu1 %v398_v1  ;;  %v305_v50 = vld [vmem:[%s514_s5] ss:$0 sm:$0xff]  ;;  %p381_p3 = por %p380_p2, %p379_p1 }
  0x12   :  { %330 = vmatpush3.bf16.msra.mxu0 %v362_v7  ;;  %v306_v52 = vld [vmem:[%s515_s6] ss:$0 sm:$0xff] }
  0x13   :  { %331 = vmatprep.subr.bf16.mxu0 %v398_v1  ;;  %p382_p4 = pnand %p381_p3, %p375_p0 }
  0x14   :  { %348 = vmatpush3.bf16.msra.mxu1 %v369_v15 }
  0x16   :  { %332 = vmatpush3.bf16.msra.mxu0 %v363_v8 }
  0x17   :  { %333 = vmatprep.subr.bf16.mxu0 %v398_v1 }
  0x1a   :  { %334 = vmatpush3.bf16.msra.mxu0 %v364_v9 }
  0x1b   :  { %335 = vmatprep.subr.bf16.mxu0 %v398_v1 }
  0x1e   :  { %336 = vmatpush3.bf16.msra.mxu0 %v365_v10 }
  0x21   :  { %338 = vmatmul.mubr.bf16.vlgmr.msra.gmra.mrb[0].mxu0 %v30_v13 }
  0xf4   :  { %v136_v17 = vpop.f32.mrb[0].mxu0 }
  0xf5   :  { %v137_v18 = vadd.f32 %v290_v16, %v136_v17  ;;  %v339_v19 = vpop.f32.mrb[1].mxu0 }
  0xf6   :  { %v139_v20 = vpop.f32.mrb[2].mxu0 }
  0xf7   :  { %v140_v21 = vadd.f32 %v290_v16, %v139_v20  ;;  %v340_v22 = vpop.f32.mrb[3].mxu0  ;;  %v143_v23 = vmax.f32 %v137_v18, 0.0 }
  0xf9   :  { %v144_v24 = vmax.f32 %v140_v21, 0.0 }
  0xfb   :  { %v145_v25 = vpack.c.bf16 %v144_v24, %v143_v23 }
  0xfd   :  { %350 = vmatmul.mubr.msk.bf16.vlgmr.msra.gmra.mrb[0].mxu1 %vm185_vm1, %v145_v25 }
 0x1d0   :  { %v223_v27 = vpop.f32.mrb[0].mxu1 }
 0x1d1   :  { %v224_v28 = vadd.f32 %v299_v26, %v223_v27  ;;  %v351_v29 = vpop.f32.mrb[1].mxu1 }
 0x1d2   :  { %v226_v30 = vpop.f32.mrb[2].mxu1 }
 0x1d3   :  { %v227_v31 = vadd.f32 %v299_v26, %v226_v30  ;;  %v352_v32 = vpop.f32.mrb[3].mxu1  ;;  %v230_v33 = vadd.f32 %v224_v28, %v28_v11 }
 0x1d5   :  { %232 = vadd.xlane.f32.xlu0 %v230_v33  ;;  %v231_v34 = vadd.f32 %v227_v31, %v29_v12 }
 0x1d9   :  { %234 = vadd.xlane.f32.xlu0 %v231_v34 }
 0x262   :  { %v233_v35 = vpop.xlane.xlu0 %232 }
 0x263   :  { %v236_v36 = vmul.f32 0.0078125, %v233_v35 }
 0x265   :  { %v238_v37 = vsub.f32 %v230_v33, %v236_v36 }
 0x266   :  { %v235_v38 = vpop.xlane.xlu0 %234 }
 0x267   :  { %v237_v39 = vmul.f32 0.0078125, %v235_v38  ;;  %v240_v40 = vmul.f32 %v238_v37, %v238_v37 }
 0x269   :  { %v239_v41 = vsub.f32 %v231_v34, %v237_v39  ;;  %242 = vadd.xlane.f32.xlu1 %v240_v40 }
 0x26b   :  { %v241_v42 = vmul.f32 %v239_v41, %v239_v41 }
 0x26d   :  { %244 = vadd.xlane.f32.xlu1 %v241_v42 }
 0x2f6   :  { %v243_v43 = vpop.xlane.xlu1 %242 }
 0x2f7   :  { %v246_v44 = vmul.f32 0.0078125, %v243_v43 }
 0x2f9   :  { %v248_v45 = vadd.f32 1e-06, %v246_v44 }
 0x2fa   :  { %v245_v46 = vpop.xlane.xlu1 %244 }
 0x2fb   :  { %370 = vrsqrt.f32 %v248_v45  ;;  %v247_v47 = vmul.f32 0.0078125, %v245_v46 }
 0x2fd   :  { %v249_v48 = vadd.f32 1e-06, %v247_v47 }
 0x2ff   :  { %372 = vrsqrt.f32 %v249_v48 }
 0x305   :  { %v371_v49 = vpop.eup %370 }
 0x306   :  { %v252_v51 = vmul.f32 %v371_v49, %v238_v37 }
 0x308   :  { %v261_v53 = vmul.f32 %v305_v50, %v252_v51 }
 0x309   :  { %v373_v54 = vpop.eup %372 }
 0x30a   :  { %v253_v55 = vmul.f32 %v373_v54, %v239_v41  ;;  %v270_v56 = vadd.f32 %v306_v52, %v261_v53 }
 0x30c   :  { %v262_v57 = vmul.f32 %v305_v50, %v253_v55  ;;  %272 = vst [vmem:[#allocation2] sm:$0xff] %v270_v56 }
 0x30e   :  { %v271_v58 = vadd.f32 %v306_v52, %v262_v57 }
 0x310   :  { %273 = vst [vmem:[#allocation2 + $0x8] sm:$0xff] %v271_v58 }
 0x311   :  { %385 = shalt.err (!%p382_p4)
}
 0x312   :  { %s386_s12 = scalar_lea.hbm %s516_s7, 256 }
 0x313   :  { %p387_p5 = scmp.ne.s32.totalorder %s516_s7, %s386_s12  ;;  %p390_p6 = scmp.lt.u32.totalorder %s386_s12, %s516_s7 }
 0x315   :  { %p392_p7 = pnand %p390_p6, %p387_p5 }
 0x317   :  { %395 = shalt.err (!%p392_p7)
}
 0x318   :  { %s401_s17 = smov 128   ;;  %s402_s18 = smov 8  }
 0x319   :  { %285 = dma.vmem_to_hbm [thread:$0]  %s280_s10, 256, %s516_s7, [#allocation3], %s401_s17, %s401_s17, %s402_s18  }
 0x31a   :  { %396 = dma.done.wait [#allocation3], 256  }
 0x31b   :  { %397 = vsyncadd [#allocation3], 4294967040 }
 0x31c   :  { %289 = vsyncpa [#allocation3], 1 }

</bundles_post_ra>
